<compile_context>
chip_gen: v7x
topology: tpu7x:2x2x1
jax: 0.10.0
libtpu: 0.0.40
codegen_flags: <defaults>
</compile_context>

<pallas_src>
import jax
import jax.numpy as jnp
from jax.experimental import pallas as pl
from jax.experimental.pallas import tpu as pltpu


def mlp_kernel(x_ref, w1_ref, b1_ref, w2_ref, b2_ref, o_ref):
    # Two MXU matmuls + VPU bias/ReLU on a lane-dense packed slab.
    x = x_ref[...]                                                     # (TR, P*D)
    h = jnp.dot(x, w1_ref[...], preferred_element_type=jnp.float32)    # (TR, P*32)
    h = jnp.maximum(h + b1_ref[...], 0.0)                              # bias + ReLU
    y = jnp.dot(h, w2_ref[...], preferred_element_type=jnp.float32)    # (TR, P*2)
    o_ref[...] = (y + b2_ref[...]).astype(o_ref.dtype)


def _round_up(n, m):
    return ((n + m - 1) // m) * m


def _pick_pack(input_dim):
    """Samples packed per slab row: make x ~128 lanes wide, output >=16 lanes."""
    p = max(1, 128 // max(1, input_dim))
    p = max(8, min(64, p))
    return (p // 8) * 8


# Explicit scoped-VMEM limit: above v5e's 16 MiB default, within v6e/v7x limits.
_VMEM_LIMIT_BYTES = 32 * 1024 * 1024


def _vmem_tile_rows(din_p, hid_p, dout_p):
    """Largest packed-row tile fitting the VMEM budget (lane padding included)."""
    lane = lambda n: _round_up(n, 128)
    # x block (2 buffers) + out block (2 buffers) + h intermediate (x2 slack).
    per_row = 4 * (2 * lane(din_p) + 2 * lane(dout_p) + 2 * lane(hid_p))
    # VMEM-resident weights/biases (counted double-buffered to be safe).
    fixed = 4 * 2 * (din_p * lane(hid_p) + 8 * lane(hid_p)
                     + hid_p * lane(dout_p) + 8 * lane(dout_p))
    budget = _VMEM_LIMIT_BYTES - fixed - (4 << 20)   # headroom for compiler temps
    return max(8, (budget // per_row) // 8 * 8)


def reseau_forward(x, w1, b1, w2, b2):
    """Forward pass of Reseau as a batch-tiled, row-packed Pallas kernel.

    x:  (batch, input_dim)  f32
    w1: (input_dim, hidden) f32   (pre-transposed vs. nn.Linear)
    b1: (1, hidden)         f32
    w2: (hidden, out_dim)   f32
    b2: (1, out_dim)        f32
    """
    batch, input_dim = x.shape
    hidden = w1.shape[1]
    out_dim = w2.shape[1]

    p = _pick_pack(input_dim)
    din_p, hid_p, dout_p = p * input_dim, p * hidden, p * out_dim

    # Block-diagonal packed weights (in a real pipeline these are built once per
    # parameter set, not per forward call; under jit they are constant-folded).
    eye = jnp.eye(p, dtype=w1.dtype)
    w1_bd = jnp.kron(eye, w1)            # (p*input_dim, p*hidden)
    w2_bd = jnp.kron(eye, w2)            # (p*hidden,   p*out_dim)
    b1_bd = jnp.tile(b1, (1, p))         # (1, p*hidden)
    b2_bd = jnp.tile(b2, (1, p))         # (1, p*out_dim)

    # Cheap pad only to the packing factor (and to >=8 packed rows for tiny
    # batches).  Large batches that are already multiples of p are untouched —
    # no extra full HBM pass over x.
    batch_p = max(_round_up(batch, p), 8 * p)
    if batch_p != batch:
        x = jnp.pad(x, ((0, batch_p - batch), (0, 0)))
    rows_p = batch_p // p
    x_p = jnp.reshape(x, (rows_p, din_p))        # free row-major reshape (bitcast)

    # Tile: as big as VMEM allows, but aim for >=8 grid steps (v7x megacore
    # sharding + DMA/compute overlap) once the batch is large enough.
    tile_r = min(_vmem_tile_rows(din_p, hid_p, dout_p),
                 _round_up(pl.cdiv(rows_p, 8), 8))
    tile_r = max(8, tile_r)
    grid = (pl.cdiv(rows_p, tile_r),)            # ragged last block handled by Pallas

    out_p = pl.pallas_call(
        mlp_kernel,
        out_shape=jax.ShapeDtypeStruct((rows_p, dout_p), jnp.float32),
        grid_spec=pltpu.PrefetchScalarGridSpec(
            num_scalar_prefetch=0,
            grid=grid,
            in_specs=[
                # x: streamed per packed-row tile, lane-dense, double-buffered.
                pl.BlockSpec((tile_r, din_p), lambda i: (i, 0)),
                # weights / biases: constant block index -> VMEM-resident.
                pl.BlockSpec((din_p, hid_p), lambda i: (0, 0)),
                pl.BlockSpec((1, hid_p), lambda i: (0, 0)),
                pl.BlockSpec((hid_p, dout_p), lambda i: (0, 0)),
                pl.BlockSpec((1, dout_p), lambda i: (0, 0)),
            ],
            out_specs=pl.BlockSpec((tile_r, dout_p), lambda i: (i, 0)),
        ),
        compiler_params=pltpu.CompilerParams(
            dimension_semantics=("parallel",),   # lets v7x shard across both TCs
            vmem_limit_bytes=_VMEM_LIMIT_BYTES,
        ),
    )(x_p, w1_bd, b1_bd, w2_bd, b2_bd)

    # Unpack: (rows_p, p*out_dim) -> (batch_p, out_dim) is again a free
    # row-major reshape; slice off padded / OOB rows.
    return jnp.reshape(out_p, (batch_p, out_dim))[:batch]


def init_params(key, input_dim, hidden_dim=32, out_dim=2):
    """Deterministic synthetic parameter init (shapes match nn.Linear)."""
    k1, k2, k3, k4 = jax.random.split(key, 4)
    # PyTorch nn.Linear stores weight as (out, in); we keep the transposed
    # (in, out) layout so the kernel computes x @ W directly.
    bound1 = 1.0 / jnp.sqrt(input_dim)
    bound2 = 1.0 / jnp.sqrt(hidden_dim)
    w1 = jax.random.uniform(k1, (input_dim, hidden_dim), jnp.float32, -bound1, bound1)
    b1 = jax.random.uniform(k2, (1, hidden_dim), jnp.float32, -bound1, bound1)
    w2 = jax.random.uniform(k3, (hidden_dim, out_dim), jnp.float32, -bound2, bound2)
    b2 = jax.random.uniform(k4, (1, out_dim), jnp.float32, -bound2, bound2)
    return w1, b1, w2, b2


if __name__ == "__main__":
    key = jax.random.PRNGKey(0)
    k_x, k_p = jax.random.split(key)

    batch, input_dim = 8, 16
    x = jax.random.normal(k_x, (batch, input_dim), jnp.float32)
    w1, b1, w2, b2 = init_params(k_p, input_dim)

    fwd = jax.jit(reseau_forward)

    out = jax.block_until_ready(fwd(x, w1, b1, w2, b2))
    ref = jnp.maximum(x @ w1 + b1, 0.0) @ w2 + b2
    assert out.shape == (batch, 2)
    assert jnp.allclose(out, ref, atol=1e-5, rtol=1e-5)

    # Ragged, multi-tile batch exercises the cdiv grid / partial last block.
    big_batch = 100
    xb = jax.random.normal(k_x, (big_batch, input_dim), jnp.float32)
    outb = jax.block_until_ready(fwd(xb, w1, b1, w2, b2))
    refb = jnp.maximum(xb @ w1 + b1, 0.0) @ w2 + b2
    assert outb.shape == (big_batch, 2)
    assert jnp.allclose(outb, refb, atol=1e-5, rtol=1e-5)

    print("KERNEL_OK")
</pallas_src>

<mosaic_0001>
module attributes {stable_mosaic.version = 11 : i64} {
  func.func @mlp_kernel(%arg0: i32, %arg1: memref<8x128xf32, #tpu.memory_space<vmem>>, %arg2: memref<128x256xf32, #tpu.memory_space<vmem>>, %arg3: memref<1x256xf32, #tpu.memory_space<vmem>>, %arg4: memref<256x16xf32, #tpu.memory_space<vmem>>, %arg5: memref<1x16xf32, #tpu.memory_space<vmem>>, %arg6: memref<8x16xf32, #tpu.memory_space<vmem>>) attributes {dimension_semantics = [#tpu.dimension_semantics<parallel>], iteration_bounds = array<i64: 1>, scalar_prefetch = 0 : i64, scratch_operands = 0 : i64, tpu.core_type = #tpu.core_type<tc>, window_params = [{transform_indices = @transform_0, window_bounds = array<i64: 8, 128>}, {pipeline_mode = #tpu.pipeline_mode<synchronous>, transform_indices = @transform_1, window_bounds = array<i64: 128, 256>}, {pipeline_mode = #tpu.pipeline_mode<synchronous>, transform_indices = @transform_2, window_bounds = array<i64: 1, 256>}, {pipeline_mode = #tpu.pipeline_mode<synchronous>, transform_indices = @transform_3, window_bounds = array<i64: 256, 16>}, {pipeline_mode = #tpu.pipeline_mode<synchronous>, transform_indices = @transform_4, window_bounds = array<i64: 1, 16>}, {transform_indices = @transform_5, window_bounds = array<i64: 8, 16>}]} {
    %c0 = arith.constant 0 : index
    %c0_0 = arith.constant 0 : index
    %0 = vector.load %arg1[%c0, %c0_0] : memref<8x128xf32, #tpu.memory_space<vmem>>, vector<8x128xf32>
    %c0_1 = arith.constant 0 : index
    %c0_2 = arith.constant 0 : index
    %1 = vector.load %arg2[%c0_1, %c0_2] : memref<128x256xf32, #tpu.memory_space<vmem>>, vector<128x256xf32>
    %cst = arith.constant dense<0.000000e+00> : vector<8x256xf32>
    %2 = tpu.matmul %0, %1, %cst {dimension_numbers = #tpu.dot_dimension_numbers<[1], [0], [0], [1], [0, 0, 1, 1], [], []>} : vector<8x128xf32>, vector<128x256xf32>, vector<8x256xf32> -> vector<8x256xf32>
    %c0_3 = arith.constant 0 : index
    %c0_4 = arith.constant 0 : index
    %3 = vector.load %arg3[%c0_3, %c0_4] : memref<1x256xf32, #tpu.memory_space<vmem>>, vector<1x256xf32>
    %4 = vector.broadcast %3 : vector<1x256xf32> to vector<8x256xf32>
    %5 = arith.addf %2, %4 : vector<8x256xf32>
    %cst_5 = arith.constant 0.000000e+00 : f32
    %6 = vector.broadcast %cst_5 : f32 to vector<8x256xf32>
    %7 = arith.maximumf %5, %6 : vector<8x256xf32>
    %c0_6 = arith.constant 0 : index
    %c0_7 = arith.constant 0 : index
    %8 = vector.load %arg4[%c0_6, %c0_7] : memref<256x16xf32, #tpu.memory_space<vmem>>, vector<256x16xf32>
    %cst_8 = arith.constant dense<0.000000e+00> : vector<8x16xf32>
    %9 = tpu.matmul %7, %8, %cst_8 {dimension_numbers = #tpu.dot_dimension_numbers<[1], [0], [0], [1], [0, 0, 1, 1], [], []>} : vector<8x256xf32>, vector<256x16xf32>, vector<8x16xf32> -> vector<8x16xf32>
    %c0_9 = arith.constant 0 : index
    %c0_10 = arith.constant 0 : index
    %10 = vector.load %arg5[%c0_9, %c0_10] : memref<1x16xf32, #tpu.memory_space<vmem>>, vector<1x16xf32>
    %11 = vector.broadcast %10 : vector<1x16xf32> to vector<8x16xf32>
    %12 = arith.addf %9, %11 : vector<8x16xf32>
    %c0_11 = arith.constant 0 : index
    %c0_12 = arith.constant 0 : index
    %13 = vector.load %arg6[%c0_11, %c0_12] : memref<8x16xf32, #tpu.memory_space<vmem>>, vector<8x16xf32>
    tpu.vector_store %arg6[%c0_11, %c0_12], %12 {strides = array<i32>} : memref<8x16xf32, #tpu.memory_space<vmem>>, vector<8x16xf32>,
    return
  }
  func.func @transform_0(%arg0: i32) -> (i32, i32) {
    %c0_i32 = arith.constant 0 : i32
    %c0_i32_0 = arith.constant 0 : i32
    return %arg0, %c0_i32 : i32, i32
  }
  func.func @transform_1(%arg0: i32) -> (i32, i32) {
    %c0_i32 = arith.constant 0 : i32
    %c0_i32_0 = arith.constant 0 : i32
    %c0_i32_1 = arith.constant 0 : i32
    return %c0_i32, %c0_i32_0 : i32, i32
  }
  func.func @transform_2(%arg0: i32) -> (i32, i32) {
    %c0_i32 = arith.constant 0 : i32
    %c0_i32_0 = arith.constant 0 : i32
    %c0_i32_1 = arith.constant 0 : i32
    return %c0_i32, %c0_i32_0 : i32, i32
  }
  func.func @transform_3(%arg0: i32) -> (i32, i32) {
    %c0_i32 = arith.constant 0 : i32
    %c0_i32_0 = arith.constant 0 : i32
    %c0_i32_1 = arith.constant 0 : i32
    return %c0_i32, %c0_i32_0 : i32, i32
  }
  func.func @transform_4(%arg0: i32) -> (i32, i32) {
    %c0_i32 = arith.constant 0 : i32
    %c0_i32_0 = arith.constant 0 : i32
    %c0_i32_1 = arith.constant 0 : i32
    return %c0_i32, %c0_i32_0 : i32, i32
  }
  func.func @transform_5(%arg0: i32) -> (i32, i32) {
    %c0_i32 = arith.constant 0 : i32
    %c0_i32_0 = arith.constant 0 : i32
    return %arg0, %c0_i32 : i32, i32
  }
}

</mosaic_0001>

<bundles_post_ra>
// kernel: reseau_forward.1
= control target key start
LH: loop header
LB: loop body
LE: loop exit
PB: predicated region body
PF: predicated region fallthrough
CT: control target
= control target key end

     0   :  { %v354_v3 = vmov 0.0   ;;  %vm247_vm0 = vcmask 130048   ;;  %s589_s1 = inlined_call_operand.vmem [shape: f32[128,256], index: 1, kind: input, shape index: {}]   ;;  %s590_s3 = inlined_call_operand.vmem [shape: f32[256,16], index: 3, kind: input, shape index: {}]   ;;  %s591_s0 = inlined_call_operand.vmem [shape: f32[8,128], index: 0, kind: input, shape index: {}]   ;;  %s592_s2 = inlined_call_operand.vmem [shape: f32[1,256], index: 2, kind: input, shape index: {}]   ;;  %s593_s4 = inlined_call_operand.vmem [shape: f32[1,16], index: 4, kind: input, shape index: {}]   ;;  %s594_s5 = inlined_call_operand.vmem [shape: f32[8,16], index: 5, kind: output, shape index: {}]  }
   0x1   :  { %v22_v0 = vld [vmem:[%s589_s1 + $0x8] sm:$0xff]  ;;  %v24_v1 = vld [vmem:[%s589_s1 + $0x18] sm:$0xff]  ;;  %v21_v2 = vld [vmem:[%s589_s1] sm:$0xff]  ;;  %129 = vmatprep.mubr.f32.mxu0 %v354_v3 }
   0x2   :  { %v289_v4 = vpack.c.bf16 %v24_v1, %v22_v0  ;;  %v23_v5 = vld [vmem:[%s589_s1 + $0x10] sm:$0xff]  ;;  %v26_v6 = vld [vmem:[%s589_s1 + $0x28] sm:$0xff]  ;;  %v28_v7 = vld [vmem:[%s589_s1 + $0x38] sm:$0xff] }
   0x3   :  { %v291_v8 = vpack.c.bf16 %v23_v5, %v21_v2  ;;  %v293_v9 = vpack.c.bf16 %v28_v7, %v26_v6  ;;  %v25_v10 = vld [vmem:[%s589_s1 + $0x20] sm:$0xff]  ;;  %v27_v11 = vld [vmem:[%s589_s1 + $0x30] sm:$0xff]  ;;  %v30_v12 = vld [vmem:[%s589_s1 + $0x48] sm:$0xff] }
   0x4   :  { %290 = vmatprep.subr.bf16.mxu0 %v289_v4  ;;  %v32_v13 = vld [vmem:[%s589_s1 + $0x58] sm:$0xff]  ;;  %v295_v14 = vpack.c.bf16 %v27_v11, %v25_v10  ;;  %v29_v16 = vld [vmem:[%s589_s1 + $0x40] sm:$0xff]  ;;  %v31_v17 = vld [vmem:[%s589_s1 + $0x50] sm:$0xff] }
   0x5   :  { %292 = vmatpush1.bf16.msra.mxu0 %v291_v8  ;;  %v297_v15 = vpack.c.bf16 %v32_v13, %v30_v12  ;;  %v34_v18 = vld [vmem:[%s589_s1 + $0x68] sm:$0xff]  ;;  %v36_v19 = vld [vmem:[%s589_s1 + $0x78] sm:$0xff]  ;;  %v299_v20 = vpack.c.bf16 %v31_v17, %v29_v16  ;;  %v33_v22 = vld [vmem:[%s589_s1 + $0x60] sm:$0xff] }
   0x6   :  { %294 = vmatprep.subr.bf16.mxu0 %v293_v9  ;;  %v301_v21 = vpack.c.bf16 %v36_v19, %v34_v18  ;;  %v35_v23 = vld [vmem:[%s589_s1 + $0x70] sm:$0xff]  ;;  %v38_v24 = vld [vmem:[%s589_s1 + $0x88] sm:$0xff]  ;;  %v40_v25 = vld [vmem:[%s589_s1 + $0x98] sm:$0xff] }
   0x7   :  { %v37_v26 = vld [vmem:[%s589_s1 + $0x80] sm:$0xff]  ;;  %v39_v27 = vld [vmem:[%s589_s1 + $0x90] sm:$0xff]  ;;  %v155_v29 = vld [vmem:[%s590_s3 + $0x88] sm:$0xff]  ;;  %v303_v31 = vpack.c.bf16 %v35_v23, %v33_v22  ;;  %v305_v36 = vpack.c.bf16 %v40_v25, %v38_v24 }
   0x8   :  { %v154_v28 = vld [vmem:[%s590_s3 + $0x80] sm:$0xff]  ;;  %v139_v33 = vld [vmem:[%s590_s3 + $0x8] sm:$0xff]  ;;  %v156_v34 = vld [vmem:[%s590_s3 + $0x90] sm:$0xff]  ;;  %v307_v46 = vpack.c.bf16 %v39_v27, %v37_v26 }
   0x9   :  { %296 = vmatpush1.bf16.msra.mxu0 %v295_v14  ;;  %v138_v30 = vld [vmem:[%s590_s3] sm:$0xff]  ;;  %v321_v32 = vpack.c.bf16 %v155_v29, %v154_v28  ;;  %v157_v35 = vld [vmem:[%s590_s3 + $0x98] sm:$0xff]  ;;  %v140_v39 = vld [vmem:[%s590_s3 + $0x10] sm:$0xff] }
   0xa   :  { %298 = vmatprep.subr.bf16.mxu0 %v297_v15  ;;  %v323_v37 = vpack.c.bf16 %v139_v33, %v138_v30  ;;  %v325_v38 = vpack.c.bf16 %v157_v35, %v156_v34  ;;  %v141_v40 = vld [vmem:[%s590_s3 + $0x18] sm:$0xff]  ;;  %v158_v41 = vld [vmem:[%s590_s3 + $0xa0] sm:$0xff]  ;;  %v42_v42 = vld [vmem:[%s589_s1 + $0xa8] sm:$0xff]  ;;  %v55_v34 = vlaneseq }
   0xb   :  { %v44_v43 = vld [vmem:[%s589_s1 + $0xb8] sm:$0xff]  ;;  %322 = vmatprep.subr.bf16.mxu1 %v321_v32  ;;  %v159_v44 = vld [vmem:[%s590_s3 + $0xa8] sm:$0xff]  ;;  %v327_v45 = vpack.c.bf16 %v141_v40, %v140_v39  ;;  %v41_v47 = vld [vmem:[%s589_s1 + $0xa0] sm:$0xff] }
   0xc   :  { %324 = vmatpush3.bf16.msra.mxu1 %v323_v37  ;;  %v329_v48 = vpack.c.bf16 %v159_v44, %v158_v41  ;;  %v142_v49 = vld [vmem:[%s590_s3 + $0x20] sm:$0xff]  ;;  %v143_v50 = vld [vmem:[%s590_s3 + $0x28] sm:$0xff]  ;;  %v309_v51 = vpack.c.bf16 %v44_v43, %v42_v42  ;;  %v43_v52 = vld [vmem:[%s589_s1 + $0xb0] sm:$0xff]  ;;  %v56_v35 = vshrl.u32 %v55_v34, 7 }
   0xd   :  { %300 = vmatpush1.bf16.msra.mxu0 %v299_v20  ;;  %326 = vmatprep.subr.bf16.mxu1 %v325_v38  ;;  %v160_v53 = vld [vmem:[%s590_s3 + $0xb0] sm:$0xff]  ;;  %v161_v54 = vld [vmem:[%s590_s3 + $0xb8] sm:$0xff]  ;;  %v46_v55 = vld [vmem:[%s589_s1 + $0xc8] sm:$0xff]  ;;  %v331_v57 = vpack.c.bf16 %v143_v50, %v142_v49  ;;  %v311_v58 = vpack.c.bf16 %v43_v52, %v41_v47 }
   0xe   :  { %302 = vmatprep.subr.bf16.mxu0 %v301_v21  ;;  %v48_v56 = vld [vmem:[%s589_s1 + $0xd8] sm:$0xff]  ;;  %v45_v59 = vld [vmem:[%s589_s1 + $0xc0] sm:$0xff]  ;;  %v333_v60 = vpack.c.bf16 %v161_v54, %v160_v53  ;;  %v144_v61 = vld [vmem:[%s590_s3 + $0x30] sm:$0xff]  ;;  %v61_v38 = vsub.s32 1, %v56_v35 }
   0xf   :  { %v145_v62 = vld [vmem:[%s590_s3 + $0x38] sm:$0xff]  ;;  %v313_v63 = vpack.c.bf16 %v48_v56, %v46_v55  ;;  %v47_v0 = vld [vmem:[%s589_s1 + $0xd0] sm:$0xff]  ;;  %v162_v1 = vld [vmem:[%s590_s3 + $0xc0] sm:$0xff] }
  0x10   :  { %328 = vmatpush3.bf16.msra.mxu1 %v327_v45  ;;  %v163_v2 = vld [vmem:[%s590_s3 + $0xc8] sm:$0xff]  ;;  %v52_v4 = vld [vmem:[%s589_s1 + $0xf8] sm:$0xff]  ;;  %v335_v5 = vpack.c.bf16 %v145_v62, %v144_v61  ;;  %v315_v6 = vpack.c.bf16 %v47_v0, %v45_v59  ;;  %v49_v7 = vld [vmem:[%s589_s1 + $0xe0] sm:$0xff] }
  0x11   :  { %304 = vmatpush1.bf16.msra.mxu0 %v303_v31  ;;  %330 = vmatprep.subr.bf16.mxu1 %v329_v48  ;;  %v50_v3 = vld [vmem:[%s589_s1 + $0xe8] sm:$0xff]  ;;  %v337_v8 = vpack.c.bf16 %v163_v2, %v162_v1  ;;  %v146_v9 = vld [vmem:[%s590_s3 + $0x40] sm:$0xff]  ;;  %v51_v12 = vld [vmem:[%s589_s1 + $0xf0] sm:$0xff] }
  0x12   :  { %306 = vmatprep.subr.bf16.mxu0 %v305_v36  ;;  %v147_v10 = vld [vmem:[%s590_s3 + $0x48] sm:$0xff]  ;;  %v317_v11 = vpack.c.bf16 %v52_v4, %v50_v3  ;;  %v164_v13 = vld [vmem:[%s590_s3 + $0xd0] sm:$0xff]  ;;  %v165_v14 = vld [vmem:[%s590_s3 + $0xd8] sm:$0xff]  ;;  %v319_v16 = vpack.c.bf16 %v51_v12, %v49_v7  ;;  %v57_v36 = vsub.s32 0, %v56_v35 }
  0x13   :  { %v339_v15 = vpack.c.bf16 %v147_v10, %v146_v9  ;;  %v341_v17 = vpack.c.bf16 %v165_v14, %v164_v13  ;;  %v148_v18 = vld [vmem:[%s590_s3 + $0x50] sm:$0xff]  ;;  %v149_v19 = vld [vmem:[%s590_s3 + $0x58] sm:$0xff]  ;;  %v166_v20 = vld [vmem:[%s590_s3 + $0xe0] sm:$0xff] }
  0x14   :  { %332 = vmatpush3.bf16.msra.mxu1 %v331_v57  ;;  %v167_v21 = vld [vmem:[%s590_s3 + $0xe8] sm:$0xff]  ;;  %v343_v22 = vpack.c.bf16 %v149_v19, %v148_v18  ;;  %v20_v23 = vld [vmem:[%s591_s0] sm:$0xff]  ;;  %v168_v28 = vld [vmem:[%s590_s3 + $0xf0] sm:$0xff] }
  0x15   :  { %308 = vmatpush1.bf16.msra.mxu0 %v307_v46  ;;  %334 = vmatprep.subr.bf16.mxu1 %v333_v60  ;;  %v345_v24 = vpack.c.bf16 %v167_v21, %v166_v20  ;;  %v150_v25 = vld [vmem:[%s590_s3 + $0x60] sm:$0xff]  ;;  %v151_v26 = vld [vmem:[%s590_s3 + $0x68] sm:$0xff]  ;;  %v169_v29 = vld [vmem:[%s590_s3 + $0xf8] sm:$0xff] }
  0x16   :  { %310 = vmatprep.subr.bf16.mxu0 %v309_v51  ;;  %v347_v27 = vpack.c.bf16 %v151_v26, %v150_v25  ;;  %v349_v30 = vpack.c.bf16 %v169_v29, %v168_v28  ;;  %v152_v31 = vld [vmem:[%s590_s3 + $0x70] sm:$0xff]  ;;  %v153_v32 = vld [vmem:[%s590_s3 + $0x78] sm:$0xff]  ;;  %v53_v37 = vld [vmem:[%s592_s2] sm:$0x3] }
  0x17   :  { %v351_v33 = vpack.c.bf16 %v153_v32, %v152_v31  ;;  %v58_v39 = vrot.slane %v53_v37, %v57_v36  ;;  %v62_v40 = vrot.slane %v53_v37, %v61_v38  ;;  %v253_v48 = vld [vmem:[%s593_s4] ss:$0 sm:$0xff] }
  0x18   :  { %336 = vmatpush3.bf16.msra.mxu1 %v335_v5 }
  0x19   :  { %312 = vmatpush1.bf16.msra.mxu0 %v311_v58  ;;  %338 = vmatprep.subr.bf16.mxu1 %v337_v8 }
  0x1a   :  { %314 = vmatprep.subr.bf16.mxu0 %v313_v63 }
  0x1c   :  { %340 = vmatpush3.bf16.msra.mxu1 %v339_v15 }
  0x1d   :  { %316 = vmatpush1.bf16.msra.mxu0 %v315_v6  ;;  %342 = vmatprep.subr.bf16.mxu1 %v341_v17 }
  0x1e   :  { %318 = vmatprep.subr.bf16.mxu0 %v317_v11 }
  0x20   :  { %344 = vmatpush3.bf16.msra.mxu1 %v343_v22 }
  0x21   :  { %320 = vmatpush1.bf16.msra.mxu0 %v319_v16  ;;  %346 = vmatprep.subr.bf16.mxu1 %v345_v24 }
  0x24   :  { %130 = vmatmul.mubr.f32.vlgmr.msra.gmra.mrb[0].mxu0 %v20_v23  ;;  %348 = vmatpush3.bf16.msra.mxu1 %v347_v27 }
  0x25   :  { %350 = vmatprep.subr.bf16.mxu1 %v349_v30 }
  0x28   :  { %352 = vmatpush3.bf16.msra.mxu1 %v351_v33 }
  0xf7   :  { %v131_v41 = vpop.f32.mrb[0].mxu0 }
  0xf8   :  { %v132_v42 = vadd.f32 %v131_v41, %v58_v39  ;;  %v133_v43 = vpop.f32.mrb[1].mxu0 }
  0xf9   :  { %v134_v44 = vadd.f32 %v133_v43, %v62_v40 }
  0xfa   :  { %v136_v46 = vmax.f32 %v132_v42, 0.0 }
  0xfb   :  { %v137_v45 = vmax.f32 %v134_v44, 0.0 }
  0xfd   :  { %241 = vmatprep.mubr.f32.mxu1 %v137_v45 }
  0xfe   :  { %242 = vmatmul.mubr.f32.vlgmr.msra.gmra.mrb[0].mxu1 %v136_v46 }
 0x1d1   :  { %v286_v47 = vpop.f32.mrb[0].mxu1 }
 0x1d2   :  { %v287_v49 = vpop.f32.mrb[1].mxu1 }
 0x1d3   :  { %v288_v50 = vadd.f32 %v287_v49, %v286_v47 }
 0x1d5   :  { %v244_v51 = vadd.f32 %v288_v50, %v253_v48 }
 0x1d7   :  { %248 = vst.msk [vmem:[%s594_s5] sm:$0xff] %vm247_vm0, %v244_v51 }

</bundles_post_ra>
